<compile_context>
chip_gen: v7x
topology: tpu7x:2x2x1
jax: 0.10.0
libtpu: 0.0.40
codegen_flags: <defaults>
</compile_context>

<pallas_src>
import functools

import jax
import jax.numpy as jnp
from jax.experimental import pallas as pl
from jax.experimental.pallas import tpu as pltpu

DROPOUT_P = 0.6
LANE = 128


def _round_up(n, m):
    return (n + m - 1) // m * m


def _row_tiling(n_rows, block_rows):
    """Pick the batch tile: big (amortize ~0.35 us/step pipeline overhead) but
    capped so the grid has >=2 steps when possible (v7x megacore)."""
    half = _round_up((n_rows + 1) // 2, 8)
    tb = max(8, min(block_rows, half))
    n_pad = _round_up(n_rows, tb)
    return tb, n_pad


def _dropout_mask(key, n_rows, h1p):
    """Pre-scaled dropout mask: values in {0, 1/(1-p)} (exact in bf16)."""
    # TODO(synk): torch's RNG stream is not reproduced bit-for-bit; only the
    # keep-prob / (1/(1-p)) scaling semantics of nn.Dropout are preserved.
    keep = jax.random.bernoulli(key, 1.0 - DROPOUT_P, (n_rows, h1p))
    return jnp.where(keep, 1.0 / (1.0 - DROPOUT_P), 0.0).astype(jnp.bfloat16)


def _mlp_kernel(*refs, training, cast_bf16):
    if training:
        (x_ref, mask_ref, w1_ref, b1_ref, w2_ref, b2_ref,
         w3_ref, b3_ref, o_ref) = refs
    else:
        (x_ref, w1_ref, b1_ref, w2_ref, b2_ref,
         w3_ref, b3_ref, o_ref) = refs

    # Cast MXU operands to bf16 only when the weights are bf16; bias add /
    # tanh / dropout math stays in f32 (accumulation is always f32).
    mxu = (lambda a: a.astype(jnp.bfloat16)) if cast_bf16 else (lambda a: a)

    # fc1 + tanh   (weights pre-transposed to (in, out); biases are (1, out))
    h = jnp.tanh(
        jnp.dot(mxu(x_ref[...]), w1_ref[...],
                preferred_element_type=jnp.float32) + b1_ref[...])

    if training:
        # mask already holds {0, 1/(1-p)} -> single VPU multiply, no select.
        h = h * mask_ref[...].astype(jnp.float32)

    # fc2 + tanh
    h = jnp.tanh(
        jnp.dot(mxu(h), w2_ref[...],
                preferred_element_type=jnp.float32) + b2_ref[...])

    # fc3 (logits, lane-padded to 128; real classes sliced in the wrapper)
    o_ref[...] = (
        jnp.dot(mxu(h), w3_ref[...],
                preferred_element_type=jnp.float32) + b3_ref[...]
    ).astype(o_ref.dtype)


def prepare_params(params, use_bf16=False):
    """Pad all hidden/output lane dims to multiples of 128 and cast weights.

    Done ONCE (hoisted out of the per-call path).  tanh(0)=0, so the padded
    columns stay exactly zero through every layer.
    params = (w1, b1, w2, b2, w3, b3) with w: (in, out), b: (1, out) or (out,).
    """
    w1, b1, w2, b2, w3, b3 = params
    H1, H2, C = w1.shape[1], w2.shape[1], w3.shape[1]
    H1p, H2p, Cp = (_round_up(n, LANE) for n in (H1, H2, C))
    wdt = jnp.bfloat16 if use_bf16 else jnp.float32
    w1p = jnp.pad(w1, ((0, 0), (0, H1p - H1))).astype(wdt)
    b1p = jnp.pad(b1.reshape(1, -1), ((0, 0), (0, H1p - H1))).astype(jnp.float32)
    w2p = jnp.pad(w2, ((0, H1p - H1), (0, H2p - H2))).astype(wdt)
    b2p = jnp.pad(b2.reshape(1, -1), ((0, 0), (0, H2p - H2))).astype(jnp.float32)
    w3p = jnp.pad(w3, ((0, H2p - H2), (0, Cp - C))).astype(wdt)
    b3p = jnp.pad(b3.reshape(1, -1), ((0, 0), (0, Cp - C))).astype(jnp.float32)
    return (w1p, b1p, w2p, b2p, w3p, b3p)


@functools.partial(
    jax.jit,
    static_argnames=("num_classes", "training", "block_rows", "out_dtype"))
def simple_network_forward(x, padded_params, dropout_key=None, *,
                           num_classes, training=False,
                           block_rows=2048, out_dtype=jnp.float32):
    """x: (N, D) f32.  padded_params: output of prepare_params()."""
    w1p, b1p, w2p, b2p, w3p, b3p = padded_params
    N, D = x.shape
    H1p, Cp = w1p.shape[1], w3p.shape[1]
    cast_bf16 = (w1p.dtype == jnp.bfloat16)

    tb, Np = _row_tiling(N, block_rows)
    if Np != N:
        x = jnp.pad(x, ((0, Np - N), (0, 0)))
    grid = (Np // tb,)

    # x is streamed un-padded on D (lane-sparse LHS is cheaper than +33% HBM).
    row_in_spec = pl.BlockSpec((tb, D), lambda i: (i, 0))
    row_out_spec = pl.BlockSpec((tb, Cp), lambda i: (i, 0))

    def resident(arr):              # weights/biases stay VMEM-resident
        return pl.BlockSpec(arr.shape, lambda i: (0, 0))

    in_specs = [row_in_spec]
    args = [x]
    if training:
        if dropout_key is None:
            raise ValueError("training=True requires a dropout_key")
        mask = _dropout_mask(dropout_key, Np, H1p)      # bf16, pre-scaled
        in_specs.append(pl.BlockSpec((tb, H1p), lambda i: (i, 0)))
        args.append(mask)
    for w in (w1p, b1p, w2p, b2p, w3p, b3p):
        in_specs.append(resident(w))
        args.append(w)

    kernel = functools.partial(_mlp_kernel, training=training,
                               cast_bf16=cast_bf16)

    out = pl.pallas_call(
        kernel,
        out_shape=jax.ShapeDtypeStruct((Np, Cp), out_dtype),
        grid=grid,
        in_specs=in_specs,
        out_specs=row_out_spec,
        compiler_params=pltpu.CompilerParams(
            dimension_semantics=("parallel",),
            vmem_limit_bytes=32 * 1024 * 1024,
        ),
    )(*args)

    return out[:N, :num_classes]


def init_params(key, input_size, num_classes):
    """Deterministic init mimicking nn.Linear's U(-1/sqrt(in), 1/sqrt(in))."""
    h1 = input_size // 3
    h2 = input_size // 2
    dims = [(input_size, h1), (h1, h2), (h2, num_classes)]
    params = []
    for (d_in, d_out) in dims:
        key, kw, kb = jax.random.split(key, 3)
        bound = 1.0 / jnp.sqrt(jnp.float32(d_in))
        w = jax.random.uniform(kw, (d_in, d_out), jnp.float32, -bound, bound)
        b = jax.random.uniform(kb, (1, d_out), jnp.float32, -bound, bound)
        params += [w, b]
    return tuple(params)


def reference_forward(x, params):
    w1, b1, w2, b2, w3, b3 = params
    h = jnp.tanh(jnp.dot(x, w1, precision="highest") + b1)  # dropout = identity (eval)
    h = jnp.tanh(jnp.dot(h, w2, precision="highest") + b2)
    return jnp.dot(h, w3, precision="highest") + b3


if __name__ == "__main__":
    INPUT_SIZE = 96     # D  -> hidden1 = 32, hidden2 = 48
    NUM_CLASSES = 10    # C
    BATCH = 8           # N

    key = jax.random.PRNGKey(0)
    key, kx, kdrop = jax.random.split(key, 3)
    x = jax.random.normal(kx, (BATCH, INPUT_SIZE), jnp.float32)
    params = init_params(key, INPUT_SIZE, NUM_CLASSES)

    padded = prepare_params(params, use_bf16=False)   # hoisted, done once
    ref = reference_forward(x, params)

    # eval-mode correctness (f32 logits, tight tolerance)
    out = jax.block_until_ready(
        simple_network_forward(x, padded, num_classes=NUM_CLASSES,
                               training=False))
    assert out.shape == (BATCH, NUM_CLASSES)
    assert jnp.allclose(out, ref, atol=1e-4, rtol=1e-4)

    # eval-mode with bf16 logits (HBM-writeback lever; loose tolerance)
    out_bf16 = jax.block_until_ready(
        simple_network_forward(x, padded, num_classes=NUM_CLASSES,
                               training=False, out_dtype=jnp.bfloat16))
    assert out_bf16.dtype == jnp.bfloat16
    assert jnp.allclose(out_bf16.astype(jnp.float32), ref, atol=5e-2, rtol=5e-2)

    # training mode: reproduce the mask and check exactly against pure JAX
    out_tr = jax.block_until_ready(
        simple_network_forward(x, padded, kdrop, num_classes=NUM_CLASSES,
                               training=True))
    assert out_tr.shape == (BATCH, NUM_CLASSES)
    tb, Np = _row_tiling(BATCH, 2048)
    H1 = params[0].shape[1]
    mask = _dropout_mask(kdrop, Np, padded[0].shape[1])
    w1, b1, w2, b2, w3, b3 = params
    h = jnp.tanh(jnp.dot(x, w1, precision="highest") + b1)
    h = h * mask[:BATCH, :H1].astype(jnp.float32)
    h = jnp.tanh(jnp.dot(h, w2, precision="highest") + b2)
    ref_tr = jnp.dot(h, w3, precision="highest") + b3
    assert jnp.allclose(out_tr, ref_tr, atol=1e-4, rtol=1e-4)
    assert bool(jnp.all(jnp.isfinite(out_tr)))

    print("KERNEL_OK")
</pallas_src>

<mosaic_0001>
module attributes {stable_mosaic.version = 11 : i64} {
  func.func @_mlp_kernel(%arg0: i32, %arg1: memref<8x96xf32, #tpu.memory_space<vmem>>, %arg2: memref<96x128xf32, #tpu.memory_space<vmem>>, %arg3: memref<1x128xf32, #tpu.memory_space<vmem>>, %arg4: memref<128x128xf32, #tpu.memory_space<vmem>>, %arg5: memref<1x128xf32, #tpu.memory_space<vmem>>, %arg6: memref<128x128xf32, #tpu.memory_space<vmem>>, %arg7: memref<1x128xf32, #tpu.memory_space<vmem>>, %arg8: memref<8x128xf32, #tpu.memory_space<vmem>>) attributes {dimension_semantics = [#tpu.dimension_semantics<parallel>], iteration_bounds = array<i64: 1>, scalar_prefetch = 0 : i64, scratch_operands = 0 : i64, tpu.core_type = #tpu.core_type<tc>, window_params = [{transform_indices = @transform_0, window_bounds = array<i64: 8, 96>}, {pipeline_mode = #tpu.pipeline_mode<synchronous>, transform_indices = @transform_1, window_bounds = array<i64: 96, 128>}, {pipeline_mode = #tpu.pipeline_mode<synchronous>, transform_indices = @transform_2, window_bounds = array<i64: 1, 128>}, {pipeline_mode = #tpu.pipeline_mode<synchronous>, transform_indices = @transform_3, window_bounds = array<i64: 128, 128>}, {pipeline_mode = #tpu.pipeline_mode<synchronous>, transform_indices = @transform_4, window_bounds = array<i64: 1, 128>}, {pipeline_mode = #tpu.pipeline_mode<synchronous>, transform_indices = @transform_5, window_bounds = array<i64: 128, 128>}, {pipeline_mode = #tpu.pipeline_mode<synchronous>, transform_indices = @transform_6, window_bounds = array<i64: 1, 128>}, {transform_indices = @transform_7, window_bounds = array<i64: 8, 128>}]} {
    %c0 = arith.constant 0 : index
    %c0_0 = arith.constant 0 : index
    %0 = vector.load %arg1[%c0, %c0_0] : memref<8x96xf32, #tpu.memory_space<vmem>>, vector<8x96xf32>
    %c0_1 = arith.constant 0 : index
    %c0_2 = arith.constant 0 : index
    %1 = vector.load %arg2[%c0_1, %c0_2] : memref<96x128xf32, #tpu.memory_space<vmem>>, vector<96x128xf32>
    %cst = arith.constant dense<0.000000e+00> : vector<8x128xf32>
    %2 = tpu.matmul %0, %1, %cst {dimension_numbers = #tpu.dot_dimension_numbers<[1], [0], [0], [1], [0, 0, 1, 1], [], []>} : vector<8x96xf32>, vector<96x128xf32>, vector<8x128xf32> -> vector<8x128xf32>
    %c0_3 = arith.constant 0 : index
    %c0_4 = arith.constant 0 : index
    %3 = vector.load %arg3[%c0_3, %c0_4] : memref<1x128xf32, #tpu.memory_space<vmem>>, vector<1x128xf32>
    %4 = vector.broadcast %3 : vector<1x128xf32> to vector<8x128xf32>
    %5 = arith.addf %2, %4 : vector<8x128xf32>
    %6 = math.tanh %5 : vector<8x128xf32>
    %c0_5 = arith.constant 0 : index
    %c0_6 = arith.constant 0 : index
    %7 = vector.load %arg4[%c0_5, %c0_6] : memref<128x128xf32, #tpu.memory_space<vmem>>, vector<128x128xf32>
    %cst_7 = arith.constant dense<0.000000e+00> : vector<8x128xf32>
    %8 = tpu.matmul %6, %7, %cst_7 {dimension_numbers = #tpu.dot_dimension_numbers<[1], [0], [0], [1], [0, 0, 1, 1], [], []>} : vector<8x128xf32>, vector<128x128xf32>, vector<8x128xf32> -> vector<8x128xf32>
    %c0_8 = arith.constant 0 : index
    %c0_9 = arith.constant 0 : index
    %9 = vector.load %arg5[%c0_8, %c0_9] : memref<1x128xf32, #tpu.memory_space<vmem>>, vector<1x128xf32>
    %10 = vector.broadcast %9 : vector<1x128xf32> to vector<8x128xf32>
    %11 = arith.addf %8, %10 : vector<8x128xf32>
    %12 = math.tanh %11 : vector<8x128xf32>
    %c0_10 = arith.constant 0 : index
    %c0_11 = arith.constant 0 : index
    %13 = vector.load %arg6[%c0_10, %c0_11] : memref<128x128xf32, #tpu.memory_space<vmem>>, vector<128x128xf32>
    %cst_12 = arith.constant dense<0.000000e+00> : vector<8x128xf32>
    %14 = tpu.matmul %12, %13, %cst_12 {dimension_numbers = #tpu.dot_dimension_numbers<[1], [0], [0], [1], [0, 0, 1, 1], [], []>} : vector<8x128xf32>, vector<128x128xf32>, vector<8x128xf32> -> vector<8x128xf32>
    %c0_13 = arith.constant 0 : index
    %c0_14 = arith.constant 0 : index
    %15 = vector.load %arg7[%c0_13, %c0_14] : memref<1x128xf32, #tpu.memory_space<vmem>>, vector<1x128xf32>
    %16 = vector.broadcast %15 : vector<1x128xf32> to vector<8x128xf32>
    %17 = arith.addf %14, %16 : vector<8x128xf32>
    %c0_15 = arith.constant 0 : index
    %c0_16 = arith.constant 0 : index
    %18 = vector.load %arg8[%c0_15, %c0_16] : memref<8x128xf32, #tpu.memory_space<vmem>>, vector<8x128xf32>
    tpu.vector_store %arg8[%c0_15, %c0_16], %17 {strides = array<i32>} : memref<8x128xf32, #tpu.memory_space<vmem>>, vector<8x128xf32>,
    return
  }
  func.func @transform_0(%arg0: i32) -> (i32, i32) {
    %c0_i32 = arith.constant 0 : i32
    %c0_i32_0 = arith.constant 0 : i32
    return %arg0, %c0_i32 : i32, i32
  }
  func.func @transform_1(%arg0: i32) -> (i32, i32) {
    %c0_i32 = arith.constant 0 : i32
    %c0_i32_0 = arith.constant 0 : i32
    %c0_i32_1 = arith.constant 0 : i32
    return %c0_i32, %c0_i32_0 : i32, i32
  }
  func.func @transform_2(%arg0: i32) -> (i32, i32) {
    %c0_i32 = arith.constant 0 : i32
    %c0_i32_0 = arith.constant 0 : i32
    %c0_i32_1 = arith.constant 0 : i32
    return %c0_i32, %c0_i32_0 : i32, i32
  }
  func.func @transform_3(%arg0: i32) -> (i32, i32) {
    %c0_i32 = arith.constant 0 : i32
    %c0_i32_0 = arith.constant 0 : i32
    %c0_i32_1 = arith.constant 0 : i32
    return %c0_i32, %c0_i32_0 : i32, i32
  }
  func.func @transform_4(%arg0: i32) -> (i32, i32) {
    %c0_i32 = arith.constant 0 : i32
    %c0_i32_0 = arith.constant 0 : i32
    %c0_i32_1 = arith.constant 0 : i32
    return %c0_i32, %c0_i32_0 : i32, i32
  }
  func.func @transform_5(%arg0: i32) -> (i32, i32) {
    %c0_i32 = arith.constant 0 : i32
    %c0_i32_0 = arith.constant 0 : i32
    %c0_i32_1 = arith.constant 0 : i32
    return %c0_i32, %c0_i32_0 : i32, i32
  }
  func.func @transform_6(%arg0: i32) -> (i32, i32) {
    %c0_i32 = arith.constant 0 : i32
    %c0_i32_0 = arith.constant 0 : i32
    %c0_i32_1 = arith.constant 0 : i32
    return %c0_i32, %c0_i32_0 : i32, i32
  }
  func.func @transform_7(%arg0: i32) -> (i32, i32) {
    %c0_i32 = arith.constant 0 : i32
    %c0_i32_0 = arith.constant 0 : i32
    return %arg0, %c0_i32 : i32, i32
  }
}

</mosaic_0001>

<bundles_post_ra>
// kernel: simple_network_forward.1
= control target key start
LH: loop header
LB: loop body
LE: loop exit
PB: predicated region body
PF: predicated region fallthrough
CT: control target
= control target key end

     0   :  { %12 = vsyncpa [#allocation3], 0  ;;  %s879_s0 = inlined_call_operand.hbm [shape: f32[8,96], index: 0, kind: input, shape index: {}]   ;;  %s880_s1 = inlined_call_operand.hbm [shape: f32[96,128], index: 1, kind: input, shape index: {}]   ;;  %s881_s2 = inlined_call_operand.vmem [shape: f32[1,128], index: 2, kind: input, shape index: {}]   ;;  %s882_s3 = inlined_call_operand.hbm [shape: f32[128,128], index: 3, kind: input, shape index: {}]   ;;  %s883_s4 = inlined_call_operand.vmem [shape: f32[1,128], index: 4, kind: input, shape index: {}]   ;;  %s884_s5 = inlined_call_operand.hbm [shape: f32[128,128], index: 5, kind: input, shape index: {}]   ;;  %s885_s6 = inlined_call_operand.vmem [shape: f32[1,128], index: 6, kind: input, shape index: {}]   ;;  %s886_s7 = inlined_call_operand.hbm [shape: f32[8,128], index: 7, kind: output, shape index: {}]  }
   0x1   :  { %13 = vsyncpa [#allocation6], 0 }
   0x2   :  { %14 = vsyncpa [#allocation9], 0 }
   0x3   :  { %15 = vsyncpa [#allocation4], 0  ;;  %s726_s24 = smov [#allocation5]   ;;  %s608_s28 = scalar_lea.hbm %s880_s1, 1536 }
   0x4   :  { %s31_s25 = sshll.u32 %s726_s24, 4  ;;  %p609_p0 = scmp.ne.s32.totalorder %s880_s1, %s608_s28  ;;  %s32_s25 = int_to_ptr.vmem [resolvable:$true] %s31_s25 }
   0x5   :  { %p612_p1 = scmp.lt.u32.totalorder %s608_s28, %s880_s1 }
   0x7   :  { %p614_p2 = pnand %p612_p1, %p609_p0 }
   0x9   :  { %617 = shalt.err (!%p614_p2)
}
   0xa   :  { %s618_s10 = scalar_lea.vmem %s32_s25, 1536  ;;  %p623_p4 = scmp.lt.s32.totalorder %s32_s25, %s32_s25 }
   0xb   :  { %p619_p3 = scmp.ne.s32.totalorder %s32_s25, %s618_s10  ;;  %p624_p5 = scmp.lt.s32.totalorder %s618_s10, %s618_s10 }
   0xd   :  { %p625_p6 = por %p624_p5, %p623_p4 }
   0xf   :  { %p626_p7 = pnand %p625_p6, %p619_p3 }
  0x11   :  { %629 = shalt.err (!%p626_p7)
}
  0x12   :  { %s727_s11 = smov 128   ;;  %s728_s12 = smov 8  }
  0x13   :  { %37 = dma.hbm_to_vmem [thread:$0]  %s880_s1, 1536, %s32_s25, [#allocation6], %s727_s11, %s727_s11, %s728_s12  }
  0x14   :  { %s729_s15 = smov [#allocation2]   ;;  %s730_s17 = smov [#allocation7]  }
  0x15   :  { %s22_s16 = sshll.u32 %s729_s15, 4  ;;  %s45_s18 = sshll.u32 %s730_s17, 4  ;;  %s23_s16 = int_to_ptr.vmem [resolvable:$true] %s22_s16  ;;  %s46_s18 = int_to_ptr.vmem [resolvable:$true] %s45_s18 }
  0x16   :  { %s630_s21 = scalar_lea.hbm %s879_s0, 128 }
  0x17   :  { %p631_p8 = scmp.ne.s32.totalorder %s879_s0, %s630_s21  ;;  %p634_p9 = scmp.lt.u32.totalorder %s630_s21, %s879_s0 }
  0x19   :  { %p636_p10 = pnand %p634_p9, %p631_p8 }
  0x1b   :  { %639 = shalt.err (!%p636_p10)
}
  0x1c   :  { %s640_s1 = scalar_lea.vmem %s23_s16, 128  ;;  %p645_p12 = scmp.lt.s32.totalorder %s23_s16, %s23_s16 }
  0x1d   :  { %p641_p11 = scmp.ne.s32.totalorder %s23_s16, %s640_s1  ;;  %p646_p13 = scmp.lt.s32.totalorder %s640_s1, %s640_s1 }
  0x1f   :  { %p647_p0 = por %p646_p13, %p645_p12 }
  0x21   :  { %p648_p1 = pnand %p647_p0, %p641_p11 }
  0x23   :  { %651 = shalt.err (!%p648_p1)
}
  0x24   :  { %25 = dma.hbm_to_vmem [thread:$0]  %s879_s0, 128, %s23_s16, [#allocation3]  }
  0x25   :  { %s652_s30 = scalar_lea.hbm %s882_s3, 2048 }
  0x26   :  { %p653_p2 = scmp.ne.s32.totalorder %s882_s3, %s652_s30  ;;  %p656_p3 = scmp.lt.u32.totalorder %s652_s30, %s882_s3 }
  0x28   :  { %p658_p4 = pnand %p656_p3, %p653_p2 }
  0x2a   :  { %661 = shalt.err (!%p658_p4)
}
  0x2b   :  { %s662_s14 = scalar_lea.vmem %s46_s18, 2048  ;;  %p667_p6 = scmp.lt.s32.totalorder %s46_s18, %s46_s18 }
  0x2c   :  { %p663_p5 = scmp.ne.s32.totalorder %s46_s18, %s662_s14  ;;  %p668_p7 = scmp.lt.s32.totalorder %s662_s14, %s662_s14 }
  0x2e   :  { %p669_p8 = por %p668_p7, %p667_p6 }
  0x30   :  { %p670_p9 = pnand %p669_p8, %p663_p5 }
  0x32   :  { %673 = shalt.err (!%p670_p9)
}
  0x33   :  { %51 = dma.hbm_to_vmem [thread:$0]  %s882_s3, 2048, %s46_s18, [#allocation6], %s727_s11, %s727_s11, %s728_s12  }
  0x34   :  { %s731_s16 = smov [#allocation8]   ;;  %s674_s21 = scalar_lea.hbm %s884_s5, 2048 }
  0x35   :  { %s59_s17 = sshll.u32 %s731_s16, 4  ;;  %p675_p10 = scmp.ne.s32.totalorder %s884_s5, %s674_s21  ;;  %s60_s17 = int_to_ptr.vmem [resolvable:$true] %s59_s17 }
  0x36   :  { %p678_p11 = scmp.lt.u32.totalorder %s674_s21, %s884_s5 }
  0x38   :  { %p680_p12 = pnand %p678_p11, %p675_p10 }
  0x3a   :  { %683 = shalt.err (!%p680_p12)
}
  0x3b   :  { %s684_s1 = scalar_lea.vmem %s60_s17, 2048  ;;  %p689_p0 = scmp.lt.s32.totalorder %s60_s17, %s60_s17 }
  0x3c   :  { %p685_p13 = scmp.ne.s32.totalorder %s60_s17, %s684_s1  ;;  %p690_p1 = scmp.lt.s32.totalorder %s684_s1, %s684_s1 }
  0x3e   :  { %p691_p2 = por %p690_p1, %p689_p0 }
  0x40   :  { %p692_p3 = pnand %p691_p2, %p685_p13 }
  0x42   :  { %695 = shalt.err (!%p692_p3)
}
  0x43   :  { %65 = dma.hbm_to_vmem [thread:$0]  %s884_s5, 2048, %s60_s17, [#allocation9], %s727_s11, %s727_s11, %s728_s12  }
  0x44   :  { %718 = dma.done.wait [#allocation3], 128  }
  0x45   :  { %719 = vsyncadd [#allocation3], 4294967168 }
  0x46   :  { %720 = dma.done.wait [#allocation6], 3584  }
  0x47   :  { %721 = vsyncadd [#allocation6], 4294963712 }
  0x48   :  { %722 = dma.done.wait [#allocation9], 2048  }
  0x49   :  { %723 = vsyncadd [#allocation9], 4294965248  ;;  %v732_v0 = vmov 0.0|0.0   ;;  %vm733_vm0 = vmmov 0   ;;  %v734_v1 = vmov 0.0   ;;  %v81_v2 = vld [vmem:[#allocation5] sm:$0xff] }
  0x4a   :  { %528 = vmatprep.subr.bf16.mxu0 %v732_v0  ;;  %455 = vmatprep.mubr.msk.f32.mxu0 %vm733_vm0, %v734_v1  ;;  %v82_v3 = vld [vmem:[#allocation5 + $0x8] sm:$0xff]  ;;  %v83_v4 = vld [vmem:[#allocation5 + $0x10] sm:$0xff]  ;;  %v84_v6 = vld [vmem:[#allocation5 + $0x18] sm:$0xff]  ;;  %vm100_vm1 = vcmask 785408   ;;  %s735_s28 = smov [#allocation10]  }
  0x4b   :  { %546 = vmatprep.subr.bf16.mxu1 %v732_v0  ;;  %490 = vmatprep.mubr.msk.f32.mxu1 %vm733_vm0, %v734_v1  ;;  %v529_v5 = vpack.c.bf16 %v82_v3, %v81_v2  ;;  %v532_v7 = vpack.c.bf16 %v84_v6, %v83_v4  ;;  %v85_v8 = vld [vmem:[#allocation5 + $0x20] sm:$0xff]  ;;  %v86_v9 = vld [vmem:[#allocation5 + $0x28] sm:$0xff]  ;;  %v177_v13 = vld [vmem:[#allocation7 + $0x10] sm:$0xff]  ;;  %s369_s29 = sshll.u32 %s735_s28, 4  ;;  %s370_s29 = int_to_ptr.vmem [resolvable:$true] %s369_s29 }
  0x4c   :  { %v175_v10 = vld [vmem:[#allocation7] sm:$0xff]  ;;  %v176_v11 = vld [vmem:[#allocation7 + $0x8] sm:$0xff]  ;;  %v178_v14 = vld [vmem:[#allocation7 + $0x18] sm:$0xff]  ;;  %v535_v15 = vpack.c.bf16 %v86_v9, %v85_v8  ;;  %s696_s30 = scalar_lea.vmem %s370_s29, 128  ;;  %p701_p5 = scmp.lt.s32.totalorder %s370_s29, %s370_s29 }
  0x4d   :  { %530 = vmatpush3.bf16.msra.mxu0 %v529_v5  ;;  %v547_v12 = vpack.c.bf16 %v176_v11, %v175_v10  ;;  %v87_v16 = vld [vmem:[#allocation5 + $0x30] sm:$0xff]  ;;  %v550_v17 = vpack.c.bf16 %v178_v14, %v177_v13  ;;  %v88_v18 = vld [vmem:[#allocation5 + $0x38] sm:$0xff]  ;;  %v179_v19 = vld [vmem:[#allocation7 + $0x20] sm:$0xff]  ;;  %p697_p4 = scmp.ne.s32.totalorder %s370_s29, %s696_s30  ;;  %p702_p6 = scmp.lt.s32.totalorder %s696_s30, %s696_s30 }
  0x4e   :  { %531 = vmatprep.subr.bf16.mxu0 %v732_v0  ;;  %v180_v20 = vld [vmem:[#allocation7 + $0x28] sm:$0xff]  ;;  %v538_v21 = vpack.c.bf16 %v88_v18, %v87_v16  ;;  %v89_v22 = vld [vmem:[#allocation5 + $0x40] sm:$0xff]  ;;  %v181_v25 = vld [vmem:[#allocation7 + $0x30] sm:$0xff] }
  0x4f   :  { %548 = vmatpush3.bf16.msra.mxu1 %v547_v12  ;;  %v553_v23 = vpack.c.bf16 %v180_v20, %v179_v19  ;;  %v90_v24 = vld [vmem:[#allocation5 + $0x48] sm:$0xff]  ;;  %v182_v26 = vld [vmem:[#allocation7 + $0x38] sm:$0xff]  ;;  %v91_v28 = vld [vmem:[#allocation5 + $0x50] sm:$0xff]  ;;  %p703_p7 = por %p702_p6, %p701_p5 }
  0x50   :  { %549 = vmatprep.subr.bf16.mxu1 %v732_v0  ;;  %v541_v27 = vpack.c.bf16 %v90_v24, %v89_v22  ;;  %v556_v29 = vpack.c.bf16 %v182_v26, %v181_v25  ;;  %v92_v30 = vld [vmem:[#allocation5 + $0x58] sm:$0xff]  ;;  %v183_v31 = vld [vmem:[#allocation7 + $0x40] sm:$0xff]  ;;  %v184_v32 = vld [vmem:[#allocation7 + $0x48] sm:$0xff] }
  0x51   :  { %533 = vmatpush3.bf16.msra.mxu0 %v532_v7  ;;  %v544_v33 = vpack.c.bf16 %v92_v30, %v91_v28  ;;  %v559_v34 = vpack.c.bf16 %v184_v32, %v183_v31  ;;  %v80_v35 = vld [vmem:[#allocation2] sm:$0xff]  ;;  %v185_v36 = vld [vmem:[#allocation7 + $0x50] sm:$0xff]  ;;  %v187_v39 = vld [vmem:[#allocation7 + $0x60] sm:$0xff]  ;;  %p704_p8 = pnand %p703_p7, %p697_p4 }
  0x52   :  { %534 = vmatprep.subr.bf16.mxu0 %v732_v0  ;;  %v186_v37 = vld [vmem:[#allocation7 + $0x58] sm:$0xff]  ;;  %v188_v40 = vld [vmem:[#allocation7 + $0x68] sm:$0xff]  ;;  %v189_v42 = vld [vmem:[#allocation7 + $0x70] sm:$0xff] }
  0x53   :  { %551 = vmatpush3.bf16.msra.mxu1 %v550_v17  ;;  %v562_v38 = vpack.c.bf16 %v186_v37, %v185_v36  ;;  %v565_v41 = vpack.c.bf16 %v188_v40, %v187_v39  ;;  %v190_v43 = vld [vmem:[#allocation7 + $0x78] sm:$0xff]  ;;  %v269_v45 = vld [vmem:[#allocation8] sm:$0xff]  ;;  %v270_v46 = vld [vmem:[#allocation8 + $0x8] sm:$0xff] }
  0x54   :  { %552 = vmatprep.subr.bf16.mxu1 %v732_v0  ;;  %v568_v44 = vpack.c.bf16 %v190_v43, %v189_v42  ;;  %v271_v47 = vld [vmem:[#allocation8 + $0x10] sm:$0xff]  ;;  %v571_v48 = vpack.c.bf16 %v270_v46, %v269_v45  ;;  %v272_v49 = vld [vmem:[#allocation8 + $0x18] sm:$0xff]  ;;  %v273_v51 = vld [vmem:[#allocation8 + $0x20] sm:$0xff] }
  0x55   :  { %536 = vmatpush3.bf16.msra.mxu0 %v535_v15  ;;  %v574_v50 = vpack.c.bf16 %v272_v49, %v271_v47  ;;  %v274_v52 = vld [vmem:[#allocation8 + $0x28] sm:$0xff]  ;;  %v275_v54 = vld [vmem:[#allocation8 + $0x30] sm:$0xff]  ;;  %v276_v55 = vld [vmem:[#allocation8 + $0x38] sm:$0xff] }
  0x56   :  { %537 = vmatprep.subr.bf16.mxu0 %v732_v0  ;;  %v577_v53 = vpack.c.bf16 %v274_v52, %v273_v51  ;;  %v580_v56 = vpack.c.bf16 %v276_v55, %v275_v54  ;;  %v277_v57 = vld [vmem:[#allocation8 + $0x40] sm:$0xff]  ;;  %v278_v58 = vld [vmem:[#allocation8 + $0x48] sm:$0xff]  ;;  %v380_v60 = vld [vmem:[%s881_s2] ss:$0 sm:$0xff] }
  0x57   :  { %554 = vmatpush3.bf16.msra.mxu1 %v553_v23  ;;  %v583_v59 = vpack.c.bf16 %v278_v58, %v277_v57  ;;  %v279_v2 = vld [vmem:[#allocation8 + $0x50] sm:$0xff]  ;;  %v280_v3 = vld [vmem:[#allocation8 + $0x58] sm:$0xff]  ;;  %v281_v5 = vld [vmem:[#allocation8 + $0x60] sm:$0xff] }
  0x58   :  { %555 = vmatprep.subr.bf16.mxu1 %v732_v0  ;;  %v586_v4 = vpack.c.bf16 %v280_v3, %v279_v2  ;;  %v282_v6 = vld [vmem:[#allocation8 + $0x68] sm:$0xff]  ;;  %v283_v8 = vld [vmem:[#allocation8 + $0x70] sm:$0xff]  ;;  %v284_v9 = vld [vmem:[#allocation8 + $0x78] sm:$0xff] }
  0x59   :  { %539 = vmatpush3.bf16.msra.mxu0 %v538_v21  ;;  %v589_v7 = vpack.c.bf16 %v282_v6, %v281_v5  ;;  %v592_v10 = vpack.c.bf16 %v284_v9, %v283_v8  ;;  %v382_v11 = vld [vmem:[%s883_s4] ss:$0 sm:$0xff] }
  0x5a   :  { %540 = vmatprep.subr.bf16.mxu0 %v732_v0  ;;  %v383_v16 = vld [vmem:[%s885_s6] ss:$0 sm:$0xff] }
  0x5b   :  { %557 = vmatpush3.bf16.msra.mxu1 %v556_v29 }
  0x5c   :  { %558 = vmatprep.subr.bf16.mxu1 %v732_v0 }
  0x5d   :  { %542 = vmatpush3.bf16.msra.mxu0 %v541_v27 }
  0x5e   :  { %543 = vmatprep.subr.bf16.mxu0 %v732_v0 }
  0x5f   :  { %560 = vmatpush3.bf16.msra.mxu1 %v559_v34 }
  0x60   :  { %561 = vmatprep.subr.bf16.mxu1 %v732_v0 }
  0x61   :  { %545 = vmatpush3.bf16.msra.mxu0 %v544_v33 }
  0x62   :  { %570 = vmatprep.subr.bf16.mxu0 %v732_v0 }
  0x63   :  { %563 = vmatpush3.bf16.msra.mxu1 %v562_v38 }
  0x64   :  { %456 = vmatmul.mubr.msk.f32.vlgmr.msra.gmra.mrb[0].mxu0 %vm100_vm1, %v80_v35  ;;  %564 = vmatprep.subr.bf16.mxu1 %v732_v0 }
  0x65   :  { %525 = vmatprep.mubr.msk.f32.mxu0 %vm733_vm0, %v734_v1  ;;  %572 = vmatpush3.bf16.msra.mxu0 %v571_v48 }
  0x66   :  { %573 = vmatprep.subr.bf16.mxu0 %v732_v0 }
  0x67   :  { %566 = vmatpush3.bf16.msra.mxu1 %v565_v41 }
  0x68   :  { %567 = vmatprep.subr.bf16.mxu1 %v732_v0 }
  0x69   :  { %575 = vmatpush3.bf16.msra.mxu0 %v574_v50 }
  0x6a   :  { %576 = vmatprep.subr.bf16.mxu0 %v732_v0 }
  0x6b   :  { %569 = vmatpush3.bf16.msra.mxu1 %v568_v44 }
  0x6d   :  { %578 = vmatpush3.bf16.msra.mxu0 %v577_v53 }
  0x6e   :  { %579 = vmatprep.subr.bf16.mxu0 %v732_v0 }
  0x71   :  { %581 = vmatpush3.bf16.msra.mxu0 %v580_v56 }
  0x72   :  { %582 = vmatprep.subr.bf16.mxu0 %v732_v0 }
  0x75   :  { %584 = vmatpush3.bf16.msra.mxu0 %v583_v59 }
  0x76   :  { %585 = vmatprep.subr.bf16.mxu0 %v732_v0 }
  0x79   :  { %587 = vmatpush3.bf16.msra.mxu0 %v586_v4 }
  0x7a   :  { %588 = vmatprep.subr.bf16.mxu0 %v732_v0 }
  0x7d   :  { %590 = vmatpush3.bf16.msra.mxu0 %v589_v7 }
  0x7e   :  { %591 = vmatprep.subr.bf16.mxu0 %v732_v0 }
  0x81   :  { %593 = vmatpush3.bf16.msra.mxu0 %v592_v10 }
 0x137   :  { %v170_v61 = vpop.f32.mrb[0].mxu0 }
 0x138   :  { %v171_v62 = vadd.f32 %v380_v60, %v170_v61  ;;  %v457_v63 = vpop.f32.mrb[1].mxu0 }
 0x13a   :  { %604 = vtanh.f32 %v171_v62 }
 0x144   :  { %v605_v1 = vpop.eup %604 }
 0x145   :  { %491 = vmatmul.mubr.f32.vlgmr.msra.gmra.mrb[0].mxu1 %v605_v1 }
 0x218   :  { %v264_v12 = vpop.f32.mrb[0].mxu1 }
 0x219   :  { %v265_v13 = vadd.f32 %v382_v11, %v264_v12  ;;  %v492_v14 = vpop.f32.mrb[1].mxu1 }
 0x21b   :  { %606 = vtanh.f32 %v265_v13 }
 0x225   :  { %v607_v15 = vpop.eup %606 }
 0x226   :  { %526 = vmatmul.mubr.f32.vlgmr.msra.gmra.mrb[2].mxu0 %v607_v15 }
 0x2f9   :  { %v358_v17 = vpop.f32.mrb[2].mxu0 }
 0x2fa   :  { %v359_v18 = vadd.f32 %v383_v16, %v358_v17  ;;  %v527_v0 = vpop.f32.mrb[3].mxu0 }
 0x2fc   :  { %362 = vst [vmem:[#allocation10] sm:$0xff] %v359_v18 }
 0x2fd   :  { %707 = shalt.err (!%p704_p8)
}
 0x2fe   :  { %s708_s9 = scalar_lea.hbm %s886_s7, 128 }
 0x2ff   :  { %p709_p9 = scmp.ne.s32.totalorder %s886_s7, %s708_s9  ;;  %p712_p10 = scmp.lt.u32.totalorder %s708_s9, %s886_s7 }
 0x301   :  { %p714_p11 = pnand %p712_p10, %p709_p9 }
 0x303   :  { %717 = shalt.err (!%p714_p11)
}
 0x304   :  { %372 = dma.vmem_to_hbm [thread:$0]  %s370_s29, 128, %s886_s7, [#allocation4]  }
 0x305   :  { %724 = dma.done.wait [#allocation4], 128  }
 0x306   :  { %725 = vsyncadd [#allocation4], 4294967168 }
 0x307   :  { %376 = vsyncpa [#allocation3], 1 }
 0x308   :  { %377 = vsyncpa [#allocation6], 1 }
 0x309   :  { %378 = vsyncpa [#allocation9], 1 }
 0x30a   :  { %379 = vsyncpa [#allocation4], 1 }

</bundles_post_ra>
